<compile_context>
chip_gen: v7x
topology: tpu7x:2x2x1
jax: 0.10.0
libtpu: 0.0.40
codegen_flags: <defaults>
</compile_context>

<pallas_src>
import functools

import jax
import jax.numpy as jnp
import numpy as np
from jax.experimental import pallas as pl
from jax.experimental.pallas import tpu as pltpu


def cgnl_kernel(x_ref, wtpg_ref, wzbd_ref, matt_ref, mgn_ref,
                gamma_ref, beta_ref, o_ref, *, planes, eps):
    """One batch element per grid step.

    x_ref:      (1, HW, Cin)      f32 input activations (also the residual)
    wtpg_ref:   (Cin, 3*planes)   bf16 fused theta|phi|g 1x1 conv weights
    wzbd_ref:   (planes, Cin)     bf16 block-diagonal grouped z 1x1 conv weight
    matt_ref:   (planes, planes)  f32 within-group mask (optionally pre-scaled by 1/sqrt(cpg*HW))
    mgn_ref:    (Cin, Cin)        f32 within-group mask pre-divided by (HW*cig)
    gamma/beta: (1, Cin)          f32 GroupNorm affine params
    o_ref:      (1, HW, Cin)      output
    """
    x = x_ref[0]                          # (HW, Cin) f32
    xb = x.astype(jnp.bfloat16)

    # theta / phi / g 1x1 convs fused into a single MXU matmul (bf16 inputs, f32 accumulation).
    tpg = jnp.dot(xb, wtpg_ref[...], preferred_element_type=jnp.float32)   # (HW, 3*planes)
    t = tpg[:, 0 * planes:1 * planes]                                      # (HW, planes)
    p = tpg[:, 1 * planes:2 * planes]                                      # (HW, planes)
    g = tpg[:, 2 * planes:3 * planes]                                      # (HW, planes)

    # att = bmm(p.view(b,1,chw), g.view(b,chw,1)) per group:
    # reduce p*g over HW to a per-plane row, then sum within each group (and apply the
    # optional 1/sqrt(cpg*HW) scale) via the host-built block mask. All in f32.
    pg = jnp.sum(p * g, axis=0, keepdims=True)                              # (1, planes)
    att = jnp.dot(pg, matt_ref[...], preferred_element_type=jnp.float32)    # (1, planes)

    # x = bmm(att, t), then the grouped z 1x1 conv as ONE block-diagonal matmul that
    # directly produces the full-width (HW, Cin) result.
    tz = (t * att).astype(jnp.bfloat16)                                     # (HW, planes)
    y = jnp.dot(tz, wzbd_ref[...], preferred_element_type=jnp.float32)      # (HW, Cin)

    # GroupNorm with one-pass statistics: per-channel sum / sum-of-squares over HW,
    # spread to per-group values via the block mask (already divided by HW*cig).
    s1 = jnp.sum(y, axis=0, keepdims=True)                                  # (1, Cin)
    s2 = jnp.sum(y * y, axis=0, keepdims=True)                              # (1, Cin)
    mean = jnp.dot(s1, mgn_ref[...], preferred_element_type=jnp.float32)    # (1, Cin)
    ex2 = jnp.dot(s2, mgn_ref[...], preferred_element_type=jnp.float32)     # (1, Cin)
    var = ex2 - mean * mean
    inv = jax.lax.rsqrt(var + eps)
    scale = inv * gamma_ref[...]                   # (1, Cin)
    shift = beta_ref[...] - mean * scale           # (1, Cin)

    # Single full-width, lane-dense store (GroupNorm affine + residual fused, f32).
    o_ref[0] = (y * scale + shift + x).astype(o_ref.dtype)


def spatial_cgnl(x, wt, wp, wg, wz, gamma, beta, *, groups, use_scale=False, eps=1e-5):
    """x: (B, HW, Cin) float32; wt/wp/wg: (Cin, planes); wz: (groups, cpg, cig);
    gamma/beta: (1, Cin). Returns (B, HW, Cin) float32."""
    B, HW, Cin = x.shape
    planes = wt.shape[1]
    cpg = planes // groups   # planes-channels per group
    cig = Cin // groups      # inplanes-channels per group

    # ---- host-side weight preprocessing ----
    # fused theta|phi|g weight: (Cin, 3*planes)
    wtpg = jnp.concatenate([wt, wp, wg], axis=1)

    # block-diagonal grouped z weight: (planes, Cin)
    eye_g = jnp.eye(groups, dtype=wz.dtype)
    wz_bd = jnp.einsum('gpc,gh->gphc', wz, eye_g).reshape(planes, Cin)

    # within-group mask over planes channels; folds in the optional attention scale
    gid_p = np.arange(planes) // cpg
    m_att = (gid_p[:, None] == gid_p[None, :]).astype(np.float32)
    if use_scale:
        m_att = m_att / np.sqrt(cpg * HW)

    # within-group averaging mask over inplanes channels (pre-divided by group size)
    gid_c = np.arange(Cin) // cig
    m_gn = (gid_c[:, None] == gid_c[None, :]).astype(np.float32) / float(HW * cig)

    wtpg_b = wtpg.astype(jnp.bfloat16)
    wz_b = wz_bd.astype(jnp.bfloat16)
    m_att = jnp.asarray(m_att)
    m_gn = jnp.asarray(m_gn)
    gamma = gamma.astype(jnp.float32)
    beta = beta.astype(jnp.float32)

    kern = functools.partial(cgnl_kernel, planes=planes, eps=eps)
    return pl.pallas_call(
        kern,
        out_shape=jax.ShapeDtypeStruct((B, HW, Cin), x.dtype),
        grid_spec=pltpu.PrefetchScalarGridSpec(
            num_scalar_prefetch=0,
            grid=(B,),
            in_specs=[
                pl.BlockSpec((1, HW, Cin), lambda b: (b, 0, 0)),
                pl.BlockSpec((Cin, 3 * planes), lambda b: (0, 0)),
                pl.BlockSpec((planes, Cin), lambda b: (0, 0)),
                pl.BlockSpec((planes, planes), lambda b: (0, 0)),
                pl.BlockSpec((Cin, Cin), lambda b: (0, 0)),
                pl.BlockSpec((1, Cin), lambda b: (0, 0)),
                pl.BlockSpec((1, Cin), lambda b: (0, 0)),
            ],
            out_specs=pl.BlockSpec((1, HW, Cin), lambda b: (b, 0, 0)),
        ),
        compiler_params=pltpu.CompilerParams(dimension_semantics=("parallel",)),
    )(x, wtpg_b, wz_b, m_att, m_gn, gamma, beta)


def spatial_cgnl_reference(x, wt, wp, wg, wz, gamma, beta, *, groups, use_scale=False, eps=1e-5):
    """Pure-JAX (f32) reference matching the PyTorch forward (channels-last layout)."""
    B, HW, Cin = x.shape
    planes = wt.shape[1]
    cpg = planes // groups
    cig = Cin // groups
    t = jnp.einsum('bnc,cp->bnp', x, wt)
    p = jnp.einsum('bnc,cp->bnp', x, wp)
    g = jnp.einsum('bnc,cp->bnp', x, wg)
    outs = []
    for gi in range(groups):
        pg = p[:, :, gi * cpg:(gi + 1) * cpg]
        gg = g[:, :, gi * cpg:(gi + 1) * cpg]
        tg = t[:, :, gi * cpg:(gi + 1) * cpg]
        att = jnp.sum(pg * gg, axis=(1, 2), keepdims=True)
        if use_scale:
            att = att / np.sqrt(cpg * HW)
        xg = att * tg
        yg = jnp.einsum('bnp,pc->bnc', xg, wz[gi])
        mean = jnp.mean(yg, axis=(1, 2), keepdims=True)
        var = jnp.mean((yg - mean) ** 2, axis=(1, 2), keepdims=True)
        yg = (yg - mean) / jnp.sqrt(var + eps)
        yg = yg * gamma[0, gi * cig:(gi + 1) * cig] + beta[0, gi * cig:(gi + 1) * cig]
        outs.append(yg + x[:, :, gi * cig:(gi + 1) * cig])
    return jnp.concatenate(outs, axis=-1)


if __name__ == "__main__":
    # Module config: SpatialCGNL(inplanes=16, planes=8, use_scale=False, groups=2)
    B, Cin, H, W = 2, 16, 8, 8
    planes, groups, use_scale = 8, 2, False
    HW = H * W
    cpg, cig = planes // groups, Cin // groups

    key = jax.random.PRNGKey(0)
    kx, kt, kp, kg, kz, kgm, kbt = jax.random.split(key, 7)

    # Input in PyTorch NCHW, converted to the kernel layout [B, HW, C].
    x_nchw = jax.random.normal(kx, (B, Cin, H, W), dtype=jnp.float32)
    x = jnp.transpose(x_nchw, (0, 2, 3, 1)).reshape(B, HW, Cin)

    # Deterministic synthetic weights (torch shapes noted in comments).
    wt = 0.1 * jax.random.normal(kt, (Cin, planes), dtype=jnp.float32)   # torch: (planes, Cin, 1, 1)
    wp = 0.1 * jax.random.normal(kp, (Cin, planes), dtype=jnp.float32)
    # Correlate wg with wp so the per-group attention scalar is bounded away from zero:
    # GroupNorm makes the output depend only on sign(att), so a near-zero att would make the
    # bf16-vs-f32 comparison ill-conditioned (a property of the module, not of the kernel).
    wg = 0.5 * wp + 0.05 * jax.random.normal(kg, (Cin, planes), dtype=jnp.float32)
    wz = 0.1 * jax.random.normal(kz, (groups, cpg, cig), dtype=jnp.float32)  # torch: (Cin, planes//groups, 1, 1)
    gamma = 1.0 + 0.1 * jax.random.normal(kgm, (1, Cin), dtype=jnp.float32)  # GroupNorm weight
    beta = 0.1 * jax.random.normal(kbt, (1, Cin), dtype=jnp.float32)         # GroupNorm bias

    out = spatial_cgnl(x, wt, wp, wg, wz, gamma, beta,
                       groups=groups, use_scale=use_scale)
    out = jax.block_until_ready(out)

    ref = spatial_cgnl_reference(x, wt, wp, wg, wz, gamma, beta,
                                 groups=groups, use_scale=use_scale)
    ref = jax.block_until_ready(ref)

    # Tolerance accounts for bf16 MXU inputs in the kernel vs. the all-f32 reference.
    np.testing.assert_allclose(np.asarray(out), np.asarray(ref), rtol=5e-2, atol=5e-2)
    print("KERNEL_OK")
</pallas_src>

<mosaic_0001>
module attributes {stable_mosaic.version = 11 : i64} {
  func.func @cgnl_kernel(%arg0: i32, %arg1: memref<1x64x16xf32, #tpu.memory_space<vmem>>, %arg2: memref<16x24xbf16, #tpu.memory_space<vmem>>, %arg3: memref<8x16xbf16, #tpu.memory_space<vmem>>, %arg4: memref<8x8xf32, #tpu.memory_space<vmem>>, %arg5: memref<16x16xf32, #tpu.memory_space<vmem>>, %arg6: memref<1x16xf32, #tpu.memory_space<vmem>>, %arg7: memref<1x16xf32, #tpu.memory_space<vmem>>, %arg8: memref<1x64x16xf32, #tpu.memory_space<vmem>>) attributes {dimension_semantics = [#tpu.dimension_semantics<parallel>], iteration_bounds = array<i64: 2>, scalar_prefetch = 0 : i64, scratch_operands = 0 : i64, tpu.core_type = #tpu.core_type<tc>, window_params = [{transform_indices = @transform_0, window_bounds = array<i64: 1, 64, 16>}, {pipeline_mode = #tpu.pipeline_mode<synchronous>, transform_indices = @transform_1, window_bounds = array<i64: 16, 24>}, {pipeline_mode = #tpu.pipeline_mode<synchronous>, transform_indices = @transform_2, window_bounds = array<i64: 8, 16>}, {pipeline_mode = #tpu.pipeline_mode<synchronous>, transform_indices = @transform_3, window_bounds = array<i64: 8, 8>}, {pipeline_mode = #tpu.pipeline_mode<synchronous>, transform_indices = @transform_4, window_bounds = array<i64: 16, 16>}, {pipeline_mode = #tpu.pipeline_mode<synchronous>, transform_indices = @transform_5, window_bounds = array<i64: 1, 16>}, {pipeline_mode = #tpu.pipeline_mode<synchronous>, transform_indices = @transform_6, window_bounds = array<i64: 1, 16>}, {transform_indices = @transform_7, window_bounds = array<i64: 1, 64, 16>}]} {
    %c0 = arith.constant 0 : index
    %c0_0 = arith.constant 0 : index
    %c0_1 = arith.constant 0 : index
    %0 = vector.load %arg1[%c0, %c0_0, %c0_1] : memref<1x64x16xf32, #tpu.memory_space<vmem>>, vector<1x64x16xf32>
    %1 = vector.shape_cast %0 : vector<1x64x16xf32> to vector<64x16xf32>
    %2 = arith.truncf %1 : vector<64x16xf32> to vector<64x16xbf16>
    %c0_2 = arith.constant 0 : index
    %c0_3 = arith.constant 0 : index
    %3 = vector.load %arg2[%c0_2, %c0_3] : memref<16x24xbf16, #tpu.memory_space<vmem>>, vector<16x24xbf16>
    %cst = arith.constant dense<0.000000e+00> : vector<64x24xf32>
    %4 = tpu.matmul %2, %3, %cst {dimension_numbers = #tpu.dot_dimension_numbers<[1], [0], [0], [1], [0, 0, 1, 1], [], []>} : vector<64x16xbf16>, vector<16x24xbf16>, vector<64x24xf32> -> vector<64x24xf32>
    %5 = vector.extract_strided_slice %4 {offsets = [0, 0], sizes = [64, 8], strides = [1, 1]} : vector<64x24xf32> to vector<64x8xf32>
    %6 = vector.extract_strided_slice %4 {offsets = [0, 8], sizes = [64, 8], strides = [1, 1]} : vector<64x24xf32> to vector<64x8xf32>
    %7 = vector.extract_strided_slice %4 {offsets = [0, 16], sizes = [64, 8], strides = [1, 1]} : vector<64x24xf32> to vector<64x8xf32>
    %8 = arith.mulf %6, %7 : vector<64x8xf32>
    %cst_4 = arith.constant dense<0.000000e+00> : vector<8xf32>
    %9 = vector.multi_reduction <add>, %8, %cst_4 [0] : vector<64x8xf32> to vector<8xf32>
    %10 = vector.shape_cast %9 : vector<8xf32> to vector<1x8xf32>
    %c0_5 = arith.constant 0 : index
    %c0_6 = arith.constant 0 : index
    %11 = vector.load %arg4[%c0_5, %c0_6] : memref<8x8xf32, #tpu.memory_space<vmem>>, vector<8x8xf32>
    %cst_7 = arith.constant dense<0.000000e+00> : vector<1x8xf32>
    %12 = tpu.matmul %10, %11, %cst_7 {dimension_numbers = #tpu.dot_dimension_numbers<[1], [0], [0], [1], [0, 0, 1, 1], [], []>} : vector<1x8xf32>, vector<8x8xf32>, vector<1x8xf32> -> vector<1x8xf32>
    %13 = vector.broadcast %12 : vector<1x8xf32> to vector<64x8xf32>
    %14 = arith.mulf %5, %13 : vector<64x8xf32>
    %15 = arith.truncf %14 : vector<64x8xf32> to vector<64x8xbf16>
    %c0_8 = arith.constant 0 : index
    %c0_9 = arith.constant 0 : index
    %16 = vector.load %arg3[%c0_8, %c0_9] : memref<8x16xbf16, #tpu.memory_space<vmem>>, vector<8x16xbf16>
    %cst_10 = arith.constant dense<0.000000e+00> : vector<64x16xf32>
    %17 = tpu.matmul %15, %16, %cst_10 {dimension_numbers = #tpu.dot_dimension_numbers<[1], [0], [0], [1], [0, 0, 1, 1], [], []>} : vector<64x8xbf16>, vector<8x16xbf16>, vector<64x16xf32> -> vector<64x16xf32>
    %cst_11 = arith.constant dense<0.000000e+00> : vector<16xf32>
    %18 = vector.multi_reduction <add>, %17, %cst_11 [0] : vector<64x16xf32> to vector<16xf32>
    %19 = vector.shape_cast %18 : vector<16xf32> to vector<1x16xf32>
    %20 = arith.mulf %17, %17 : vector<64x16xf32>
    %cst_12 = arith.constant dense<0.000000e+00> : vector<16xf32>
    %21 = vector.multi_reduction <add>, %20, %cst_12 [0] : vector<64x16xf32> to vector<16xf32>
    %22 = vector.shape_cast %21 : vector<16xf32> to vector<1x16xf32>
    %c0_13 = arith.constant 0 : index
    %c0_14 = arith.constant 0 : index
    %23 = vector.load %arg5[%c0_13, %c0_14] : memref<16x16xf32, #tpu.memory_space<vmem>>, vector<16x16xf32>
    %cst_15 = arith.constant dense<0.000000e+00> : vector<1x16xf32>
    %24 = tpu.matmul %19, %23, %cst_15 {dimension_numbers = #tpu.dot_dimension_numbers<[1], [0], [0], [1], [0, 0, 1, 1], [], []>} : vector<1x16xf32>, vector<16x16xf32>, vector<1x16xf32> -> vector<1x16xf32>
    %c0_16 = arith.constant 0 : index
    %c0_17 = arith.constant 0 : index
    %25 = vector.load %arg5[%c0_16, %c0_17] : memref<16x16xf32, #tpu.memory_space<vmem>>, vector<16x16xf32>
    %cst_18 = arith.constant dense<0.000000e+00> : vector<1x16xf32>
    %26 = tpu.matmul %22, %25, %cst_18 {dimension_numbers = #tpu.dot_dimension_numbers<[1], [0], [0], [1], [0, 0, 1, 1], [], []>} : vector<1x16xf32>, vector<16x16xf32>, vector<1x16xf32> -> vector<1x16xf32>
    %27 = arith.mulf %24, %24 : vector<1x16xf32>
    %28 = arith.subf %26, %27 : vector<1x16xf32>
    %cst_19 = arith.constant 9.99999974E-6 : f32
    %29 = vector.broadcast %cst_19 : f32 to vector<1x16xf32>
    %30 = arith.addf %28, %29 : vector<1x16xf32>
    %31 = math.rsqrt %30 : vector<1x16xf32>
    %c0_20 = arith.constant 0 : index
    %c0_21 = arith.constant 0 : index
    %32 = vector.load %arg6[%c0_20, %c0_21] : memref<1x16xf32, #tpu.memory_space<vmem>>, vector<1x16xf32>
    %33 = arith.mulf %31, %32 : vector<1x16xf32>
    %c0_22 = arith.constant 0 : index
    %c0_23 = arith.constant 0 : index
    %34 = vector.load %arg7[%c0_22, %c0_23] : memref<1x16xf32, #tpu.memory_space<vmem>>, vector<1x16xf32>
    %35 = arith.mulf %24, %33 : vector<1x16xf32>
    %36 = arith.subf %34, %35 : vector<1x16xf32>
    %37 = vector.broadcast %33 : vector<1x16xf32> to vector<64x16xf32>
    %38 = arith.mulf %17, %37 : vector<64x16xf32>
    %39 = vector.broadcast %36 : vector<1x16xf32> to vector<64x16xf32>
    %40 = arith.addf %38, %39 : vector<64x16xf32>
    %41 = arith.addf %40, %1 : vector<64x16xf32>
    %c0_24 = arith.constant 0 : index
    %c0_25 = arith.constant 0 : index
    %c0_26 = arith.constant 0 : index
    %42 = vector.load %arg8[%c0_24, %c0_25, %c0_26] : memref<1x64x16xf32, #tpu.memory_space<vmem>>, vector<1x64x16xf32>
    %43 = vector.shape_cast %42 : vector<1x64x16xf32> to vector<64x16xf32>
    %44 = vector.shape_cast %41 : vector<64x16xf32> to vector<1x64x16xf32>
    tpu.vector_store %arg8[%c0_24, %c0_25, %c0_26], %44 {strides = array<i32>} : memref<1x64x16xf32, #tpu.memory_space<vmem>>, vector<1x64x16xf32>,
    return
  }
  func.func @transform_0(%arg0: i32) -> (i32, i32, i32) {
    %c0_i32 = arith.constant 0 : i32
    %c0_i32_0 = arith.constant 0 : i32
    %c0_i32_1 = arith.constant 0 : i32
    return %arg0, %c0_i32, %c0_i32_0 : i32, i32, i32
  }
  func.func @transform_1(%arg0: i32) -> (i32, i32) {
    %c0_i32 = arith.constant 0 : i32
    %c0_i32_0 = arith.constant 0 : i32
    %c0_i32_1 = arith.constant 0 : i32
    return %c0_i32, %c0_i32_0 : i32, i32
  }
  func.func @transform_2(%arg0: i32) -> (i32, i32) {
    %c0_i32 = arith.constant 0 : i32
    %c0_i32_0 = arith.constant 0 : i32
    %c0_i32_1 = arith.constant 0 : i32
    return %c0_i32, %c0_i32_0 : i32, i32
  }
  func.func @transform_3(%arg0: i32) -> (i32, i32) {
    %c0_i32 = arith.constant 0 : i32
    %c0_i32_0 = arith.constant 0 : i32
    %c0_i32_1 = arith.constant 0 : i32
    return %c0_i32, %c0_i32_0 : i32, i32
  }
  func.func @transform_4(%arg0: i32) -> (i32, i32) {
    %c0_i32 = arith.constant 0 : i32
    %c0_i32_0 = arith.constant 0 : i32
    %c0_i32_1 = arith.constant 0 : i32
    return %c0_i32, %c0_i32_0 : i32, i32
  }
  func.func @transform_5(%arg0: i32) -> (i32, i32) {
    %c0_i32 = arith.constant 0 : i32
    %c0_i32_0 = arith.constant 0 : i32
    %c0_i32_1 = arith.constant 0 : i32
    return %c0_i32, %c0_i32_0 : i32, i32
  }
  func.func @transform_6(%arg0: i32) -> (i32, i32) {
    %c0_i32 = arith.constant 0 : i32
    %c0_i32_0 = arith.constant 0 : i32
    %c0_i32_1 = arith.constant 0 : i32
    return %c0_i32, %c0_i32_0 : i32, i32
  }
  func.func @transform_7(%arg0: i32) -> (i32, i32, i32) {
    %c0_i32 = arith.constant 0 : i32
    %c0_i32_0 = arith.constant 0 : i32
    %c0_i32_1 = arith.constant 0 : i32
    return %arg0, %c0_i32, %c0_i32_0 : i32, i32, i32
  }
}

</mosaic_0001>

<bundles_post_ra>
// kernel: tpu_custom_call.1
= control target key start
LH: loop header
LB: loop body
LE: loop exit
PB: predicated region body
PF: predicated region fallthrough
CT: control target
= control target key end

     0   :  { %s1075_s24 = smov 0   ;;  %s1286_s0 = inlined_call_operand.vmem [shape: f32[2,64,16], index: 0, kind: input, shape index: {}]   ;;  %s1287_s1 = inlined_call_operand.vmem [shape: bf16[16,24], index: 1, kind: input, shape index: {}]   ;;  %s1288_s2 = inlined_call_operand.vmem [shape: bf16[8,16], index: 2, kind: input, shape index: {}]   ;;  %s1289_s3 = inlined_call_operand.vmem [shape: f32[8,8], index: 3, kind: input, shape index: {}]   ;;  %s1290_s4 = inlined_call_operand.vmem [shape: f32[16,16], index: 4, kind: input, shape index: {}]   ;;  %s1291_s5 = inlined_call_operand.vmem [shape: f32[1,16], index: 5, kind: input, shape index: {}]   ;;  %s1292_s6 = inlined_call_operand.vmem [shape: f32[1,16], index: 6, kind: input, shape index: {}]   ;;  %s1293_s7 = inlined_call_operand.vmem [shape: f32[2,64,16], index: 7, kind: output, shape index: {}]  }
   0x1 LB: > { %s919_s25 = sadd.s32 4294967295, %s1029_s24   ;;  %p923_p0 = scmp.ge.s32.totalorder %s1029_s24, 1  ;;  %s1029_s24 = sphi %s1075_s24, %s17_s24  }
   0x2   : > { %p237_p1 = scmp.lt.s32.totalorder %s1029_s24, 3 }
   0x4   : > { %p238_p2 = pnand %p923_p0, %p237_p1 }
   0x5   : > { %v1020_v0 = vld [vmem:[%s1287_s1] sm:$0xff] (!%p238_p2)   ;;  %p269_p3 = scmp.lt.s32.totalorder (!%p238_p2), %s919_s25, 1  ;;  %vm300_vm0 = vcmask (!%p238_p2), 130048   ;;  %s1031_s9 = smov (!%p238_p2), 120   ;;  %v1032_v22 = vmov (!%p238_p2), 0.0   ;;  %vm1033_vm1 = vmmov (!%p238_p2), 0   ;;  %v517_v63 = vlaneseq (!%p238_p2) }
   0x6   : > { %241 = sbr.rel (%p238_p2) target bundleno = 1202 (0x4b2), region = 48  ;;  %962 = vmatprep.subr.bf16.mxu0 (!%p238_p2), %v1020_v0  ;;  %v440_v21 = vld [vmem:[%s1289_s3] sm:$0xff] (!%p238_p2)  ;;  %972 = vmatprep.subr.mxu1 (!%p238_p2), %v1032_v22  ;;  %vm418_vm2 = vcmask (!%p238_p2), 130112   ;;  %vm444_vm3 = vcmask (!%p238_p2), 64512   ;;  %vm546_vm4 = vcmask (!%p238_p2), 1043456  }
   0x7   : > { %963 = vmatpush3.bf16.msra.mxu0 (!%p238_p2), %v1020_v0  ;;  %974 = vmatprep.mubr.msk.f32.mxu1 (!%p238_p2), %vm1033_vm1, %v1032_v22  ;;  %v533_v61 = vld [vmem:[%s1288_s2] sm:$0xf] (!%p238_p2)  ;;  %v518_v0 = vshrl.u32 (!%p238_p2), %v517_v63, 7 }
   0x8   : > { %973 = vmatpush3.msra.mxu1 (!%p238_p2), %v440_v21  ;;  %v548_v62 = vsel (!%p238_p2), %vm546_vm4, %v533_v61, 0 }
   0x9   : > { %1007 = vmatprep.subr.msk.bf16.mxu1 (!%p238_p2), %vm546_vm4, %v533_v61 }
   0xd   : > { %s1295_s25 = smov (!%p269_p3, %s919_s25), 1 }
   0xe   : > { %s942_s28 = sshll.u32 %s1295_s25, 6 }
   0xf   : > { %s273_s8 = scalar_lea.vmem %s1286_s0, %s942_s28  ;;  %s278_s26 = scalar_lea.vmem %s1293_s7, %s942_s28 }
  0x10   : > { %v1094_v1 = vld [vmem:[%s273_s8] sm:$0xff]  ;;  %v1096_v2 = vld [vmem:[%s273_s8 + $0x8] sm:$0xff]  ;;  %v1098_v3 = vld [vmem:[%s273_s8 + $0x10] sm:$0xff] }
  0x11   : > { %v288_v4 = vpack.c.bf16 %v1096_v2, %v1094_v1  ;;  %v1102_v5 = vld [vmem:[%s273_s8 + $0x18] sm:$0xff]  ;;  %v1104_v6 = vld [vmem:[%s273_s8 + $0x20] sm:$0xff]  ;;  %v1106_v7 = vld [vmem:[%s273_s8 + $0x28] sm:$0xff] }
  0x12   : > { %v289_v8 = vpack.c.bf16 %v1102_v5, %v1098_v3  ;;  %v290_v9 = vpack.c.bf16 %v1106_v7, %v1104_v6  ;;  %v1115_v10 = vld [vmem:[%s273_s8 + $0x30] sm:$0xff]  ;;  %v1117_v11 = vld [vmem:[%s273_s8 + $0x38] sm:$0xff] }
  0x13   : > { %964 = vmatprep.mubr.msk.bf16.mxu0 %vm300_vm0, %v288_v4  ;;  %v291_v12 = vpack.c.bf16 %v1117_v11, %v1115_v10  ;;  %v1183_v4 = vsub.s32 0, %v518_v0 }
  0x14   : > { %965 = vmatmul.mubr.msk.bf16.vlgmr.msra.gmra.mrb[0].mxu0 %vm300_vm0, %v289_v8 }
  0x15   : > { %968 = vmatprep.mubr.msk.bf16.mxu0 %vm300_vm0, %v290_v9 }
  0x1c   : > { %969 = vmatmul.mubr.msk.bf16.gmra.mrb[4].mxu0 %vm300_vm0, %v291_v12 }
  0x1d   : > { %991 = vmatprep.mubr.msk.f32.mxu0 %vm1033_vm1, %v1032_v22 }
  0xe7   : > { %v1122_v13 = vpop.f32.mrb[0].mxu0 }
  0xe8   : > { %390 = vrot.lane.b32.xlu1 %v1122_v13, %s1031_s9  ;;  %v1126_v14 = vpop.f32.mrb[1].mxu0 }
  0xe9   : > { %386 = vrot.lane.b32.xlu0 %v1126_v14, %s1031_s9  ;;  %v1130_v15 = vpop.f32.mrb[2].mxu0 }
  0xea   : > { %v1132_v16 = vpop.f32.mrb[3].mxu0 }
  0xec   : > { %392 = vrot.lane.b32.xlu1 %v1130_v15, %s1031_s9 }
  0xed   : > { %388 = vrot.lane.b32.xlu0 %v1132_v16, %s1031_s9 }
  0xef   : > { %v1138_v17 = vpop.f32.mrb[4].mxu0 }
  0xf0   : > { %v1140_v18 = vpop.f32.mrb[5].mxu0 }
  0xf1   : > { %394 = vrot.lane.b32.xlu0 %v1140_v18, %s1031_s9  ;;  %v1144_v19 = vpop.f32.mrb[6].mxu0 }
  0xf2   : > { %v1146_v20 = vpop.f32.mrb[7].mxu0 }
  0xf3   : > { %396 = vrot.lane.b32.xlu1 %v1146_v20, %s1031_s9 }
  0xf5   : > { %398 = vrot.lane.b32.xlu0 %v1138_v17, %s1031_s9 }
  0xf7   : > { %400 = vrot.lane.b32.xlu1 %v1144_v19, %s1031_s9 }
 0x15a   : > { %v391_v23 = vpop.permute.xlu1 %390 }
 0x15b   : > { %v387_v24 = vpop.permute.xlu0 %386  ;;  %v412_v28 = vmul.f32 %v1122_v13, %v391_v23 }
 0x15c   : > { %v410_v25 = vmul.f32 %v387_v24, %v1126_v14 }
 0x15d   : > { %v422_v35 = vsel %vm418_vm2, %v412_v28, 0.0 }
 0x15e   : > { %v393_v26 = vpop.permute.xlu1 %392  ;;  %v419_v30 = vsel %vm418_vm2, %v410_v25, 0.0 }
 0x15f   : > { %v389_v27 = vpop.permute.xlu0 %388  ;;  %v413_v31 = vmul.f32 %v1130_v15, %v393_v26 }
 0x160   : > { %v411_v29 = vmul.f32 %v389_v27, %v1132_v16 }
 0x161   : > { %v424_v39 = vsel %vm418_vm2, %v413_v31, 0.0 }
 0x162   : > { %v420_v32 = vsel %vm418_vm2, %v411_v29, 0.0 }
 0x163   : > { %v421_v33 = vadd.f32 %v420_v32, %v419_v30  ;;  %v395_v34 = vpop.permute.xlu0 %394 }
 0x164   : > { %v414_v36 = vmul.f32 %v395_v34, %v1140_v18 }
 0x165   : > { %v423_v37 = vadd.f32 %v422_v35, %v421_v33  ;;  %v397_v38 = vpop.permute.xlu1 %396 }
 0x166   : > { %v415_v40 = vmul.f32 %v397_v38, %v1146_v20  ;;  %v426_v43 = vsel %vm418_vm2, %v414_v36, 0.0 }
 0x167   : > { %v425_v41 = vadd.f32 %v424_v39, %v423_v37  ;;  %v399_v42 = vpop.permute.xlu0 %398 }
 0x168   : > { %v416_v44 = vmul.f32 %v1138_v17, %v399_v42  ;;  %v428_v47 = vsel %vm418_vm2, %v415_v40, 0.0 }
 0x169   : > { %v427_v45 = vadd.f32 %v426_v43, %v425_v41  ;;  %v401_v46 = vpop.permute.xlu1 %400 }
 0x16a   : > { %v417_v48 = vmul.f32 %v1144_v19, %v401_v46  ;;  %v430_v50 = vsel %vm418_vm2, %v416_v44, 0.0 }
 0x16b   : > { %v429_v49 = vadd.f32 %v428_v47, %v427_v45 }
 0x16c   : > { %v432_v52 = vsel %vm418_vm2, %v417_v48, 0.0 }
 0x16d   : > { %v431_v51 = vadd.f32 %v430_v50, %v429_v49 }
 0x16f   : > { %v433_v53 = vadd.f32 %v432_v52, %v431_v51 }
 0x171   : > { %v434_v54 = vrot.slane %v433_v53, 4 }
 0x173   : > { %v435_v55 = vadd.f32 %v434_v54, %v433_v53 }
 0x175   : > { %v436_v56 = vrot.slane %v435_v55, 2 }
 0x177   : > { %v437_v57 = vadd.f32 %v436_v56, %v435_v55 }
 0x179   : > { %v438_v58 = vrot.slane %v437_v57, 1 }
 0x17b   : > { %v439_v59 = vadd.f32 %v438_v58, %v437_v57 }
 0x17d   : > { %442 = vrot.lane.b32.xlu0 %v439_v59, %s1031_s9 }
 0x1ef   : > { %v443_v60 = vpop.permute.xlu0 %442 }
 0x1f0   : > { %975 = vmatmul.mubr.msk.f32.vlgmr.msra.gmra.mrb[0].mxu1 %vm444_vm3, %v443_v60 }
 0x1f1   : > { %978 = vmatpush3.bf16.msra.mxu1 %v548_v62 }
 0x2c3   : > { %v513_v8 = vpop.f32.mrb[0].mxu1 }
 0x2c4   : > { %v520_v9 = vrot.slane %v513_v8, %v1183_v4  ;;  %v976_v12 = vpop.f32.mrb[1].mxu1 }
 0x2c6   : > { %v521_v21 = vmul.f32 %v520_v9, %v1126_v14  ;;  %v522_v23 = vmul.f32 %v520_v9, %v1132_v16  ;;  %v523_v24 = vmul.f32 %v1122_v13, %v520_v9  ;;  %v524_v25 = vmul.f32 %v1130_v15, %v520_v9  ;;  %v665_v13 = vld [vmem:[%s1290_s4] sm:$0xff]  ;;  %v666_v14 = vld [vmem:[%s1290_s4 + $0x8] sm:$0xff] }
 0x2c7   : > { %v525_v26 = vmul.f32 %v520_v9, %v1140_v18  ;;  %v526_v27 = vmul.f32 %v520_v9, %v1146_v20  ;;  %v527_v28 = vmul.f32 %v1138_v17, %v520_v9  ;;  %v528_v29 = vmul.f32 %v1144_v19, %v520_v9 }
 0x2c8   : > { %v529_v30 = vpack.c.bf16 %v522_v23, %v521_v21  ;;  %v530_v31 = vpack.c.bf16 %v524_v25, %v523_v24  ;;  %v1002_v15 = vpack.c.bf16 %v666_v14, %v665_v13  ;;  %v1034_v16 = vmov 0.0|0.0  }
 0x2c9   : > { %v531_v32 = vpack.c.bf16 %v526_v27, %v525_v26  ;;  %v532_v33 = vpack.c.bf16 %v528_v29, %v527_v28  ;;  %1001 = vmatprep.subr.bf16.mxu0 %v1034_v16  ;;  %1004 = vmatprep.subr.bf16.mxu1 %v1034_v16 }
 0x2ca   : > { %979 = vmatprep.mubr.msk.bf16.mxu1 %vm444_vm3, %v529_v30  ;;  %1003 = vmatpush3.bf16.msra.mxu0 %v1002_v15 }
 0x2cb   : > { %980 = vmatmul.mubr.msk.bf16.vlgmr.msra.gmra.mrb[4].mxu1 %vm444_vm3, %v530_v31 }
 0x2cc   : > { %983 = vmatprep.mubr.msk.bf16.mxu1 %vm444_vm3, %v531_v32  ;;  %1006 = vmatpush3.bf16.msra.mxu1 %v1002_v15 }
 0x2d3   : > { %984 = vmatmul.mubr.msk.bf16.gmra.mrb[8].mxu1 %vm444_vm3, %v532_v33 }
 0x2d4   : > { %998 = vmatprep.mubr.msk.f32.mxu1 %vm1033_vm1, %v1032_v22 }
 0x39e   : > { %v1206_v17 = vpop.f32.mrb[4].mxu1 }
 0x39f   : > { %v1208_v18 = vpop.f32.mrb[5].mxu1  ;;  %v638_v34 = vmul.f32 %v1206_v17, %v1206_v17  ;;  %v618_v39 = vsel %vm300_vm0, %v1206_v17, 0.0 }
 0x3a0   : > { %v636_v19 = vmul.f32 %v1208_v18, %v1208_v18  ;;  %v1212_v20 = vpop.f32.mrb[6].mxu1  ;;  %v615_v35 = vsel %vm300_vm0, %v1208_v18, 0.0 }
 0x3a1   : > { %v1214_v22 = vpop.f32.mrb[7].mxu1  ;;  %v639_v41 = vmul.f32 %v1212_v20, %v1212_v20  ;;  %v647_v45 = vsel %vm300_vm0, %v638_v34, 0.0  ;;  %v620_v46 = vsel %vm300_vm0, %v1212_v20, 0.0 }
 0x3a2   : > { %v616_v36 = vsel %vm300_vm0, %v1214_v22, 0.0  ;;  %v637_v37 = vmul.f32 %v1214_v22, %v1214_v22  ;;  %v644_v40 = vsel %vm300_vm0, %v636_v19, 0.0 }
 0x3a3   : > { %v617_v38 = vadd.f32 %v616_v36, %v615_v35  ;;  %v649_v51 = vsel %vm300_vm0, %v639_v41, 0.0 }
 0x3a4   : > { %v645_v42 = vsel %vm300_vm0, %v637_v37, 0.0 }
 0x3a5   : > { %v619_v43 = vadd.f32 %v618_v39, %v617_v38  ;;  %v646_v44 = vadd.f32 %v645_v42, %v644_v40 }
 0x3a6   : > { %v1233_v47 = vpop.f32.mrb[8].mxu1 }
 0x3a7   : > { %v648_v48 = vadd.f32 %v647_v45, %v646_v44  ;;  %v600_v49 = vpop.f32.mrb[9].mxu1  ;;  %v621_v50 = vadd.f32 %v620_v46, %v619_v43  ;;  %v642_v58 = vmul.f32 %v1233_v47, %v1233_v47  ;;  %v626_v0 = vsel %vm300_vm0, %v1233_v47, 0.0  ;;  %v817_v43 = vld [vmem:[%s1291_s5] sm:$0x1] }
 0x3a8   : > { %v622_v52 = vsel %vm300_vm0, %v600_v49, 0.0  ;;  %v640_v53 = vmul.f32 %v600_v49, %v600_v49  ;;  %v986_v54 = vpop.f32.mrb[10].mxu1  ;;  %v819_v46 = vld [vmem:[%s1292_s6] sm:$0x1] }
 0x3a9   : > { %v623_v55 = vadd.f32 %v622_v52, %v621_v50  ;;  %v650_v56 = vadd.f32 %v649_v51, %v648_v48  ;;  %v603_v57 = vpop.f32.mrb[11].mxu1  ;;  %v643_v8 = vmul.f32 %v986_v54, %v986_v54  ;;  %v655_v23 = vsel %vm300_vm0, %v642_v58, 0.0 }
 0x3aa   : > { %v651_v59 = vsel %vm300_vm0, %v640_v53, 0.0  ;;  %v624_v60 = vsel %vm300_vm0, %v603_v57, 0.0  ;;  %v641_v61 = vmul.f32 %v603_v57, %v603_v57  ;;  %v628_v24 = vsel %vm300_vm0, %v986_v54, 0.0 }
 0x3ab   : > { %v652_v62 = vadd.f32 %v651_v59, %v650_v56  ;;  %v625_v63 = vadd.f32 %v624_v60, %v623_v55  ;;  %v657_v27 = vsel %vm300_vm0, %v643_v8, 0.0 }
 0x3ac   : > { %v653_v9 = vsel %vm300_vm0, %v641_v61, 0.0 }
 0x3ad   : > { %v627_v12 = vadd.f32 %v626_v0, %v625_v63  ;;  %v654_v21 = vadd.f32 %v653_v9, %v652_v62 }
 0x3af   : > { %v629_v25 = vadd.f32 %v628_v24, %v627_v12  ;;  %v656_v26 = vadd.f32 %v655_v23, %v654_v21 }
 0x3b1   : > { %v630_v28 = vrot.slane %v629_v25, 4  ;;  %v658_v29 = vadd.f32 %v657_v27, %v656_v26 }
 0x3b3   : > { %v631_v30 = vadd.f32 %v630_v28, %v629_v25  ;;  %v659_v31 = vrot.slane %v658_v29, 4 }
 0x3b5   : > { %v632_v32 = vrot.slane %v631_v30, 2  ;;  %v660_v33 = vadd.f32 %v659_v31, %v658_v29 }
 0x3b7   : > { %v633_v13 = vadd.f32 %v632_v32, %v631_v30  ;;  %v661_v14 = vrot.slane %v660_v33, 2 }
 0x3b9   : > { %v634_v15 = vrot.slane %v633_v13, 1  ;;  %v662_v16 = vadd.f32 %v661_v14, %v660_v33 }
 0x3bb   : > { %v635_v19 = vadd.f32 %v634_v15, %v633_v13  ;;  %v663_v34 = vrot.slane %v662_v16, 1 }
 0x3bd   : > { %v664_v35 = vadd.f32 %v663_v34, %v662_v16  ;;  %992 = vmatmul.mubr.msk.f32.vlgmr.msra.gmra.mrb[8].mxu0 %vm300_vm0, %v635_v19 }
 0x3bf   : > { %999 = vmatmul.mubr.msk.f32.vlgmr.msra.gmra.mrb[2].mxu1 %vm300_vm0, %v664_v35 }
 0x490   : > { %v736_v36 = vpop.f32.mrb[8].mxu0 }
 0x491   : > { %v813_v37 = vmul.f32 %v736_v36, %v736_v36  ;;  %v993_v38 = vpop.f32.mrb[9].mxu0 }
 0x492   : > { %v809_v39 = vpop.f32.mrb[2].mxu1 }
 0x493   : > { %v814_v40 = vsub.f32 %v809_v39, %v813_v37  ;;  %v1000_v41 = vpop.f32.mrb[3].mxu1 }
 0x495   : > { %v815_v42 = vadd.f32 1e-05, %v814_v40 }
 0x497   : > { %1021 = vrsqrt.f32 %v815_v42 }
 0x4a1   : > { %v1022_v44 = vpop.eup %1021 }
 0x4a2   : > { %v818_v45 = vmul.f32 %v1022_v44, %v817_v43 }
 0x4a4   : > { %v820_v48 = vmul.f32 %v818_v45, %v736_v36  ;;  %v825_v50 = vrot.slane %v818_v45, %v1183_v4 }
 0x4a6   : > { %v821_v51 = vsub.f32 %v819_v46, %v820_v48  ;;  %v826_v52 = vmul.f32 %v825_v50, %v1208_v18  ;;  %v827_v53 = vmul.f32 %v825_v50, %v1214_v22  ;;  %v828_v55 = vmul.f32 %v1206_v17, %v825_v50 }
 0x4a7   : > { %v829_v56 = vmul.f32 %v1212_v20, %v825_v50  ;;  %v830_v58 = vmul.f32 %v825_v50, %v600_v49  ;;  %v831_v59 = vmul.f32 %v825_v50, %v603_v57  ;;  %v832_v60 = vmul.f32 %v1233_v47, %v825_v50 }
 0x4a8   : > { %v833_v61 = vmul.f32 %v986_v54, %v825_v50  ;;  %v838_v62 = vrot.slane %v821_v51, %v1183_v4 }
 0x4aa   : > { %v840_v63 = vadd.f32 %v838_v62, %v826_v52  ;;  %v841_v0 = vadd.f32 %v838_v62, %v827_v53  ;;  %v842_v8 = vadd.f32 %v838_v62, %v828_v55  ;;  %v843_v9 = vadd.f32 %v838_v62, %v829_v56 }
 0x4ab   : > { %v844_v18 = vadd.f32 %v838_v62, %v830_v58  ;;  %v845_v17 = vadd.f32 %v838_v62, %v831_v59  ;;  %v846_v22 = vadd.f32 %v838_v62, %v832_v60  ;;  %v847_v20 = vadd.f32 %v838_v62, %v833_v61 }
 0x4ac   : > { %v848_v49 = vadd.f32 %v840_v63, %v1094_v1  ;;  %v849_v47 = vadd.f32 %v841_v0, %v1096_v2  ;;  %v850_v54 = vadd.f32 %v842_v8, %v1098_v3  ;;  %v851_v4 = vadd.f32 %v843_v9, %v1102_v5 }
 0x4ad   : > { %v852_v57 = vadd.f32 %v844_v18, %v1104_v6  ;;  %v853_v12 = vadd.f32 %v845_v17, %v1106_v7  ;;  %v854_v21 = vadd.f32 %v846_v22, %v1115_v10  ;;  %v855_v23 = vadd.f32 %v847_v20, %v1117_v11 }
 0x4ae   : > { %856 = vst.msk [vmem:[%s278_s26] sm:$0xff] %vm300_vm0, %v848_v49  ;;  %857 = vst.msk [vmem:[%s278_s26 + $0x8] sm:$0xff] %vm300_vm0, %v849_v47 }
 0x4af   : > { %858 = vst.msk [vmem:[%s278_s26 + $0x10] sm:$0xff] %vm300_vm0, %v850_v54  ;;  %859 = vst.msk [vmem:[%s278_s26 + $0x18] sm:$0xff] %vm300_vm0, %v851_v4 }
 0x4b0   : > { %860 = vst.msk [vmem:[%s278_s26 + $0x20] sm:$0xff] %vm300_vm0, %v852_v57  ;;  %861 = vst.msk [vmem:[%s278_s26 + $0x28] sm:$0xff] %vm300_vm0, %v853_v12 }
 0x4b1   : > { %862 = vst.msk [vmem:[%s278_s26 + $0x30] sm:$0xff] %vm300_vm0, %v854_v21  ;;  %863 = vst.msk [vmem:[%s278_s26 + $0x38] sm:$0xff] %vm300_vm0, %v855_v23 }
 0x4b2 PF: > { %s17_s24 = sadd.s32 1, %s1029_s24  }
 0x4b3   : > { %p14_p4 = scmp.ge.s32.totalorder %s17_s24, 4  }
 0x4b5   :  { %16 = sbr.rel (!%p14_p4) target bundleno = 1 (0x1), region = 78 }

</bundles_post_ra>
